<compile_context>
chip_gen: v7x
topology: tpu7x:2x2x1
jax: 0.10.0
libtpu: 0.0.40
codegen_flags: <defaults>
</compile_context>

<pallas_src>
import jax
import jax.numpy as jnp
import numpy as np
from jax.experimental import pallas as pl
from jax.experimental.pallas import tpu as pltpu

# ---- module hyperparameters (chosen so dilation*(K-1) == 2*padding, which the
#      residual addition `out + res` requires to be shape-compatible) ----------
N_IN = 4        # n_inputs
N_OUT = 8       # n_outputs  (!= N_IN so the downsample path is exercised)
KSIZE = 3       # kernel_size
STRIDE = 1      # stride
DILATION = 2    # dilation
PADDING = 2     # padding
B = 2           # batch
L = 16          # seq_len
BL = B * L      # flattened rows handled in one kernel step
# TODO(synk): dropout (p=0.2) is treated as eval-mode identity (no RNG mask).
# TODO(synk): at production sizes, re-layout with time on lanes (C_out, L_tile)
#             for lane-dense unmasked stores + full-width MXU N, and cast the
#             dot operands to bf16 (f32 accumulation); not worth it at L=16 and
#             it would exceed the f32 reference tolerance used below.
# TODO(synk): a full TCN stack should fuse several TemporalBlocks into one
#             pallas_call (activations resident in VMEM between layers); only a
#             single block is defined by this module.

assert STRIDE == 1, "stride-1 transpose conv assumed"
assert DILATION * (KSIZE - 1) == 2 * PADDING, "residual add needs L_out == L"
# equivalent regular-conv padding for the stride-1 transpose conv
Q = DILATION * (KSIZE - 1) - PADDING                         # = 2
# time offset of tap k relative to the unpadded input x
TAP_OFFSETS = tuple(k * DILATION - Q for k in range(KSIZE))  # (-2, 0, +2)
# the 1x1 downsample residual is fused into the conv1 weight via the
# zero-offset tap; a future hyperparameter change must keep this property.
assert 0 in TAP_OFFSETS, "wd fusion requires a zero-offset tap (d*(K-2) == p)"


# ------------------------------ Pallas kernel --------------------------------
def temporal_block_kernel(x_ref, w1_ref, b1_ref, w2_ref, b2_ref, o_ref):
    x = x_ref[...]                                             # (B*L, N_IN) f32

    # Boundary masks built ONCE and reused by both convs.  t_local is the time
    # index within each batch row-block; rows whose tap would read outside
    # [0, L) (including any cross-batch wrap of the flat roll) are zeroed.
    t_local = jax.lax.broadcasted_iota(jnp.int32, (BL, 1), 0) % L
    masks = {}
    for off in TAP_OFFSETS:
        if off > 0:
            masks[off] = t_local < (L - off)
        elif off < 0:
            masks[off] = t_local >= (-off)

    def taps(a):
        # Gather the K time-shifted taps of `a` (rows = flat B*L) and stack
        # them on the lane axis: (B*L, K*C).
        cols = []
        for off in TAP_OFFSETS:
            if off == 0:
                cols.append(a)
            else:
                rolled = pltpu.roll(a, shift=(-off) % BL, axis=0)  # rolled[r] = a[r+off]
                cols.append(jnp.where(masks[off], rolled, 0.0))
        return jnp.concatenate(cols, axis=1)

    # conv1 (+ fused 1x1 downsample residual) as a single MXU dot.
    y1 = jnp.dot(taps(x), w1_ref[...], preferred_element_type=jnp.float32) + b1_ref[...]
    h1 = jnp.maximum(y1[:, :N_OUT], 0.0)        # relu1 ; dropout1 = identity
    res = y1[:, N_OUT:]                         # downsample(x) residual (un-relu'd)

    # conv2 as a single dot on roll-shifted h1 taps (no VMEM scratch round trip).
    h2 = jnp.maximum(
        jnp.dot(taps(h1), w2_ref[...], preferred_element_type=jnp.float32) + b2_ref[...],
        0.0)                                    # relu2 ; dropout2 = identity

    o_ref[...] = jnp.maximum(h2 + res, 0.0).astype(o_ref.dtype)  # final relu


def temporal_block(x_flat, w1cat, b1cat, w2cat, b2r):
    """x_flat: (B*L, C_in). Returns (B*L, C_out). Single grid-less step; all
    operands (a few KiB total) live whole in VMEM."""
    return pl.pallas_call(
        temporal_block_kernel,
        out_shape=jax.ShapeDtypeStruct((BL, N_OUT), jnp.float32),
    )(x_flat, w1cat, b1cat, w2cat, b2r)


# ---------------------------- plain-JAX glue / ref ----------------------------
def weight_norm_apply(v, g):
    # PyTorch weight_norm default dim=0: weight = g * v / ||v|| with the norm
    # over all dims except dim 0. v: (C_in, C_out, K), g: (C_in, 1, 1).
    norm = jnp.sqrt(jnp.sum(v * v, axis=(1, 2), keepdims=True))
    return g * v / norm


def to_conv_form(w_eff):
    # (C_in, C_out, K) transpose-conv weight -> (K, C_in, C_out) flipped conv weight
    return jnp.flip(jnp.transpose(w_eff, (2, 0, 1)), axis=0)


def pack_weights(w1f, b1, w2f, b2, wd, bd):
    """Build the fused kernel-side weight/bias matrices.

    w1cat: (K*N_IN, 2*N_OUT) -- conv1 taps stacked on rows, with the 1x1
           downsample weight appended as extra output columns on the
           zero-offset tap's row block (that tap reads unshifted x).
    w2cat: (K*N_OUT, N_OUT)  -- conv2 taps stacked on rows.
    """
    c_in = w1f.shape[1]
    blocks = []
    for k in range(KSIZE):
        right = wd if TAP_OFFSETS[k] == 0 else jnp.zeros((c_in, N_OUT), w1f.dtype)
        blocks.append(jnp.concatenate([w1f[k], right], axis=1))
    w1cat = jnp.concatenate(blocks, axis=0)                          # (K*N_IN, 2*N_OUT)
    b1cat = jnp.concatenate([b1, bd]).reshape(1, -1)                 # (1, 2*N_OUT)
    w2cat = jnp.concatenate([w2f[k] for k in range(KSIZE)], axis=0)  # (K*N_OUT, N_OUT)
    return w1cat, b1cat, w2cat, b2.reshape(1, -1)


def conv_transpose1d_ref(x, w, b, stride, padding, dilation):
    # Reference ConvTranspose1d (PyTorch semantics). x: (B, C_in, L), w: (C_in, C_out, K)
    B_, _, L_ = x.shape
    _, C_out, K_ = w.shape
    L_full = (L_ - 1) * stride + dilation * (K_ - 1) + 1
    y = jnp.zeros((B_, C_out, L_full), jnp.float32)
    for k in range(K_):
        contrib = jnp.einsum('bil,io->bol', x, w[:, :, k])
        start = k * dilation
        y = y.at[:, :, start:start + (L_ - 1) * stride + 1:stride].add(contrib)
    L_out = L_full - 2 * padding
    y = y[:, :, padding:padding + L_out]
    return y + b[None, :, None]


def ref_forward(x, w1, b1, w2, b2, wd, bd):
    h = jnp.maximum(conv_transpose1d_ref(x, w1, b1, STRIDE, PADDING, DILATION), 0.0)
    h = jnp.maximum(conv_transpose1d_ref(h, w2, b2, STRIDE, PADDING, DILATION), 0.0)
    res = conv_transpose1d_ref(x, wd, bd, 1, 0, 1)
    return jnp.maximum(h + res, 0.0)


if __name__ == "__main__":
    key = jax.random.PRNGKey(0)
    ks = jax.random.split(key, 10)

    # input (PyTorch layout: [n_batch, n_channels, seq_length])
    x = jax.random.normal(ks[0], (B, N_IN, L), jnp.float32)

    # deterministic parameters (shapes from __init__; N(0, 0.01) weights)
    w1_v = 0.01 * jax.random.normal(ks[1], (N_IN, N_OUT, KSIZE), jnp.float32)
    g1 = 1.0 + 0.1 * jax.random.normal(ks[2], (N_IN, 1, 1), jnp.float32)
    b1 = 0.1 * jax.random.normal(ks[3], (N_OUT,), jnp.float32)
    w2_v = 0.01 * jax.random.normal(ks[4], (N_OUT, N_OUT, KSIZE), jnp.float32)
    g2 = 1.0 + 0.1 * jax.random.normal(ks[5], (N_OUT, 1, 1), jnp.float32)
    b2 = 0.1 * jax.random.normal(ks[6], (N_OUT,), jnp.float32)
    wd_full = 0.01 * jax.random.normal(ks[7], (N_IN, N_OUT, 1), jnp.float32)
    bd = 0.1 * jax.random.normal(ks[8], (N_OUT,), jnp.float32)

    # weight-norm'd effective weights (folded once in the wrapper)
    w1_eff = weight_norm_apply(w1_v, g1)
    w2_eff = weight_norm_apply(w2_v, g2)

    # kernel-form fused parameters
    w1f = to_conv_form(w1_eff)                     # (K, C_in, C_out)
    w2f = to_conv_form(w2_eff)                     # (K, C_out, C_out)
    wd = wd_full[:, :, 0]                          # (C_in, C_out)
    w1cat, b1cat, w2cat, b2r = pack_weights(w1f, b1, w2f, b2, wd, bd)

    # (B, C, L) -> (B, L, C) -> (B*L, C): wrapper-side layout plumbing only.
    x_flat = jnp.transpose(x, (0, 2, 1)).reshape(BL, N_IN)
    out_flat = temporal_block(x_flat, w1cat, b1cat, w2cat, b2r)
    out_flat = jax.block_until_ready(out_flat)
    out = jnp.transpose(out_flat.reshape(B, L, N_OUT), (0, 2, 1))   # (B, C_out, L)

    ref = ref_forward(x, w1_eff, b1, w2_eff, b2, wd_full, bd)
    np.testing.assert_allclose(np.asarray(out), np.asarray(ref),
                               rtol=1e-5, atol=1e-5)
    print("KERNEL_OK")
</pallas_src>

<mosaic_0001>
module attributes {stable_mosaic.version = 11 : i64} {
  func.func @temporal_block_kernel(%arg0: memref<32x4xf32, #tpu.memory_space<vmem>>, %arg1: memref<12x16xf32, #tpu.memory_space<vmem>>, %arg2: memref<1x16xf32, #tpu.memory_space<vmem>>, %arg3: memref<24x8xf32, #tpu.memory_space<vmem>>, %arg4: memref<1x8xf32, #tpu.memory_space<vmem>>, %arg5: memref<32x8xf32, #tpu.memory_space<vmem>>) attributes {dimension_semantics = [], scalar_prefetch = 0 : i64, scratch_operands = 0 : i64, tpu.core_type = #tpu.core_type<tc>} {
    %c0 = arith.constant 0 : index
    %c0_0 = arith.constant 0 : index
    %0 = vector.load %arg0[%c0, %c0_0] : memref<32x4xf32, #tpu.memory_space<vmem>>, vector<32x4xf32>
    %1 = tpu.iota {dimensions = array<i32: 0>} : vector<32x1xi32>
    %c16_i32 = arith.constant 16 : i32
    %c0_i32 = arith.constant 0 : i32
    %2 = arith.cmpi eq, %c16_i32, %c0_i32 : i32
    %c1_i32 = arith.constant 1 : i32
    %3 = arith.select %2, %c1_i32, %c16_i32 : i32
    %4 = vector.broadcast %3 : i32 to vector<32x1xi32>
    %5 = arith.remsi %1, %4 : vector<32x1xi32>
    %c0_i32_1 = arith.constant 0 : i32
    %6 = vector.broadcast %c0_i32_1 : i32 to vector<32x1xi32>
    %7 = arith.cmpi ne, %5, %6 : vector<32x1xi32>
    %c0_i32_2 = arith.constant 0 : i32
    %8 = vector.broadcast %c0_i32_2 : i32 to vector<32x1xi32>
    %9 = arith.cmpi slt, %5, %8 : vector<32x1xi32>
    %c0_i32_3 = arith.constant 0 : i32
    %10 = arith.cmpi slt, %3, %c0_i32_3 : i32
    %11 = vector.broadcast %10 : i1 to vector<32x1xi1>
    %12 = vector.broadcast %11 : vector<32x1xi1> to vector<32x1xi1>
    %13 = arith.xori %9, %12 : vector<32x1xi1>
    %14 = arith.andi %13, %7 : vector<32x1xi1>
    %15 = vector.broadcast %3 : i32 to vector<32x1xi32>
    %16 = arith.addi %5, %15 : vector<32x1xi32>
    %17 = arith.select %14, %16, %5 : vector<32x1xi1>, vector<32x1xi32>
    %c2_i32 = arith.constant 2 : i32
    %18 = vector.broadcast %c2_i32 : i32 to vector<32x1xi32>
    %19 = arith.cmpi sge, %17, %18 : vector<32x1xi32>
    %c14_i32 = arith.constant 14 : i32
    %20 = vector.broadcast %c14_i32 : i32 to vector<32x1xi32>
    %21 = arith.cmpi slt, %17, %20 : vector<32x1xi32>
    %c2_i32_4 = arith.constant 2 : i32
    %22 = tpu.dynamic_rotate %0 by %c2_i32_4 dim 0 : vector<32x4xf32>, i32 -> vector<32x4xf32>
    %cst = arith.constant 0.000000e+00 : f32
    %23 = vector.shape_cast %19 : vector<32x1xi1> to vector<32x1xi1>
    %24 = vector.broadcast %23 : vector<32x1xi1> to vector<32x4xi1>
    %25 = vector.broadcast %cst : f32 to vector<32x4xf32>
    %26 = arith.select %24, %22, %25 : vector<32x4xi1>, vector<32x4xf32>
    %c30_i32 = arith.constant 30 : i32
    %27 = tpu.dynamic_rotate %0 by %c30_i32 dim 0 : vector<32x4xf32>, i32 -> vector<32x4xf32>
    %cst_5 = arith.constant 0.000000e+00 : f32
    %28 = vector.shape_cast %21 : vector<32x1xi1> to vector<32x1xi1>
    %29 = vector.broadcast %28 : vector<32x1xi1> to vector<32x4xi1>
    %30 = vector.broadcast %cst_5 : f32 to vector<32x4xf32>
    %31 = arith.select %29, %27, %30 : vector<32x4xi1>, vector<32x4xf32>
    %32 = tpu.concatenate %26, %0, %31 in 1 : vector<32x4xf32>, vector<32x4xf32>, vector<32x4xf32> -> vector<32x12xf32>
    %c0_6 = arith.constant 0 : index
    %c0_7 = arith.constant 0 : index
    %33 = vector.load %arg1[%c0_6, %c0_7] : memref<12x16xf32, #tpu.memory_space<vmem>>, vector<12x16xf32>
    %cst_8 = arith.constant dense<0.000000e+00> : vector<32x16xf32>
    %34 = tpu.matmul %32, %33, %cst_8 {dimension_numbers = #tpu.dot_dimension_numbers<[1], [0], [0], [1], [0, 0, 1, 1], [], []>} : vector<32x12xf32>, vector<12x16xf32>, vector<32x16xf32> -> vector<32x16xf32>
    %c0_9 = arith.constant 0 : index
    %c0_10 = arith.constant 0 : index
    %35 = vector.load %arg2[%c0_9, %c0_10] : memref<1x16xf32, #tpu.memory_space<vmem>>, vector<1x16xf32>
    %36 = vector.broadcast %35 : vector<1x16xf32> to vector<32x16xf32>
    %37 = arith.addf %34, %36 : vector<32x16xf32>
    %38 = vector.extract_strided_slice %37 {offsets = [0, 0], sizes = [32, 8], strides = [1, 1]} : vector<32x16xf32> to vector<32x8xf32>
    %cst_11 = arith.constant 0.000000e+00 : f32
    %39 = vector.broadcast %cst_11 : f32 to vector<32x8xf32>
    %40 = arith.maximumf %38, %39 : vector<32x8xf32>
    %41 = vector.extract_strided_slice %37 {offsets = [0, 8], sizes = [32, 8], strides = [1, 1]} : vector<32x16xf32> to vector<32x8xf32>
    %c2_i32_12 = arith.constant 2 : i32
    %42 = tpu.dynamic_rotate %40 by %c2_i32_12 dim 0 : vector<32x8xf32>, i32 -> vector<32x8xf32>
    %cst_13 = arith.constant 0.000000e+00 : f32
    %43 = vector.shape_cast %19 : vector<32x1xi1> to vector<32x1xi1>
    %44 = vector.broadcast %43 : vector<32x1xi1> to vector<32x8xi1>
    %45 = vector.broadcast %cst_13 : f32 to vector<32x8xf32>
    %46 = arith.select %44, %42, %45 : vector<32x8xi1>, vector<32x8xf32>
    %c30_i32_14 = arith.constant 30 : i32
    %47 = tpu.dynamic_rotate %40 by %c30_i32_14 dim 0 : vector<32x8xf32>, i32 -> vector<32x8xf32>
    %cst_15 = arith.constant 0.000000e+00 : f32
    %48 = vector.shape_cast %21 : vector<32x1xi1> to vector<32x1xi1>
    %49 = vector.broadcast %48 : vector<32x1xi1> to vector<32x8xi1>
    %50 = vector.broadcast %cst_15 : f32 to vector<32x8xf32>
    %51 = arith.select %49, %47, %50 : vector<32x8xi1>, vector<32x8xf32>
    %52 = tpu.concatenate %46, %40, %51 in 1 : vector<32x8xf32>, vector<32x8xf32>, vector<32x8xf32> -> vector<32x24xf32>
    %c0_16 = arith.constant 0 : index
    %c0_17 = arith.constant 0 : index
    %53 = vector.load %arg3[%c0_16, %c0_17] : memref<24x8xf32, #tpu.memory_space<vmem>>, vector<24x8xf32>
    %cst_18 = arith.constant dense<0.000000e+00> : vector<32x8xf32>
    %54 = tpu.matmul %52, %53, %cst_18 {dimension_numbers = #tpu.dot_dimension_numbers<[1], [0], [0], [1], [0, 0, 1, 1], [], []>} : vector<32x24xf32>, vector<24x8xf32>, vector<32x8xf32> -> vector<32x8xf32>
    %c0_19 = arith.constant 0 : index
    %c0_20 = arith.constant 0 : index
    %55 = vector.load %arg4[%c0_19, %c0_20] : memref<1x8xf32, #tpu.memory_space<vmem>>, vector<1x8xf32>
    %56 = vector.broadcast %55 : vector<1x8xf32> to vector<32x8xf32>
    %57 = arith.addf %54, %56 : vector<32x8xf32>
    %cst_21 = arith.constant 0.000000e+00 : f32
    %58 = vector.broadcast %cst_21 : f32 to vector<32x8xf32>
    %59 = arith.maximumf %57, %58 : vector<32x8xf32>
    %60 = arith.addf %59, %41 : vector<32x8xf32>
    %cst_22 = arith.constant 0.000000e+00 : f32
    %61 = vector.broadcast %cst_22 : f32 to vector<32x8xf32>
    %62 = arith.maximumf %60, %61 : vector<32x8xf32>
    %c0_23 = arith.constant 0 : index
    %c0_24 = arith.constant 0 : index
    %63 = vector.load %arg5[%c0_23, %c0_24] : memref<32x8xf32, #tpu.memory_space<vmem>>, vector<32x8xf32>
    tpu.vector_store %arg5[%c0_23, %c0_24], %62 {strides = array<i32>} : memref<32x8xf32, #tpu.memory_space<vmem>>, vector<32x8xf32>,
    return
  }
}

</mosaic_0001>

<bundles_post_ra>
// kernel: tpu_custom_call.1
= control target key start
LH: loop header
LB: loop body
LE: loop exit
PB: predicated region body
PF: predicated region fallthrough
CT: control target
= control target key end

     0   :  { %v24_v0 = vlaneseq  ;;  %vm191_vm0 = vcmask 1043456   ;;  %s554_s24 = smov 4   ;;  %vm555_vm1 = vmmov 1   ;;  %vm159_vm8 = vcmask 31744   ;;  %s755_s0 = inlined_call_operand.vmem [shape: f32[32,4], index: 0, kind: input, shape index: {}]   ;;  %s756_s1 = inlined_call_operand.vmem [shape: f32[12,16], index: 1, kind: input, shape index: {}]   ;;  %s757_s3 = inlined_call_operand.vmem [shape: f32[24,8], index: 3, kind: input, shape index: {}]   ;;  %s758_s2 = inlined_call_operand.vmem [shape: f32[1,16], index: 2, kind: input, shape index: {}]   ;;  %s759_s4 = inlined_call_operand.vmem [shape: f32[1,8], index: 4, kind: input, shape index: {}]   ;;  %s760_s5 = inlined_call_operand.vmem [shape: f32[32,8], index: 5, kind: output, shape index: {}]  }
   0x1   :  { %v23_v1 = vld [vmem:[%s755_s0 + $0x18] sm:$0xff]  ;;  %v20_v2 = vld [vmem:[%s755_s0] sm:$0xff]  ;;  %v21_v3 = vld [vmem:[%s755_s0 + $0x8] sm:$0xff]  ;;  %vm164_vm9 = vcmask 64512   ;;  %vm178_vm10 = vcmask 97280   ;;  %vm344_vm12 = vcmask 130048  }
   0x2   :  { %137 = vrot.lane.b32.xlu1 %v23_v1, %s554_s24  ;;  %v88_v4 = vrot.slane %v23_v1, 6  ;;  %131 = vrot.lane.b32.xlu0 %v20_v2, %s554_s24  ;;  %v106_v5 = vrot.slane %v20_v2, 2  ;;  %v22_v6 = vld [vmem:[%s755_s0 + $0x10] sm:$0xff]  ;;  %v169_v7 = vld [vmem:[%s756_s1] sm:$0xff]  ;;  %v109_v8 = vrot.slane %v23_v1, 2  ;;  %v107_v9 = vrot.slane %v21_v3, 2  ;;  %vm612_vm2 = vmpackc.low %vm191_vm0, %vm555_vm1 }
   0x3   :  { %v606_v10 = vshrl.u32 %v24_v0, 7  ;;  %v87_v11 = vrot.slane %v22_v6, 6  ;;  %v170_v12 = vld [vmem:[%s756_s1 + $0x8] sm:$0xf]  ;;  %v85_v13 = vrot.slane %v20_v2, 6  ;;  %v86_v14 = vrot.slane %v21_v3, 6 }
   0x4   :  { %v108_v15 = vrot.slane %v22_v6, 2  ;;  %v539_v16 = vpack.c.bf16 %v170_v12, %v169_v7  ;;  %s556_s0 = smov 8   ;;  %v349_v57 = vld [vmem:[%s757_s3] sm:$0xff]  ;;  %v350_v58 = vld [vmem:[%s757_s3 + $0x8] sm:$0xff]  ;;  %v351_v62 = vld [vmem:[%s757_s3 + $0x10] sm:$0xff]  ;;  %s558_s3 = smov 120  }
   0x5   :  { %vm110_vm3 = vcmp.lt.s32.totalorder %v606_v10, 6  ;;  %v26_v18 = vadd.s32 8, %v606_v10  ;;  %v28_v19 = vadd.s32 24, %v606_v10  ;;  %vm89_vm4 = vcmp.lt.s32.totalorder %v606_v10, 2  ;;  %v493_v60 = vld [vmem:[%s758_s2] ss:$0 sm:$0xff] }
   0x6   :  { %133 = vrot.lane.b32.xlu0 %v21_v3, %s554_s24  ;;  %v113_v20 = vsel %vm110_vm3, %v106_v5, %v107_v9  ;;  %v112_v22 = vsel %vm110_vm3, %v107_v9, %v108_v15  ;;  %v90_v24 = vsel %vm89_vm4, %v87_v11, %v88_v4  ;;  %541 = vmatprep.subr.msk.bf16.mxu0 %vm612_vm2, %v539_v16  ;;  %v33_v34 = vand.u32 15, %v606_v10  ;;  %s557_s2 = smov 16  }
   0x7   :  { %147 = vrot.lane.b32.xlu1 %v113_v20, %s556_s0  ;;  %v40_v21 = vand.u32 15, %v26_v18  ;;  %v54_v23 = vand.u32 15, %v28_v19  ;;  %v93_v25 = vsel %vm89_vm4, %v88_v4, %v85_v13  ;;  %v92_v26 = vsel %vm89_vm4, %v85_v13, %v86_v14  ;;  %544 = vmatpush3.bf16.msk.msra.mxu0 %vm612_vm2, %v539_v16 }
   0x8   :  { %v91_v27 = vsel %vm89_vm4, %v86_v14, %v87_v11  ;;  %v114_v30 = vsel %vm110_vm3, %v109_v8, %v106_v5  ;;  %v111_v32 = vsel %vm110_vm3, %v108_v15, %v109_v8  ;;  %v27_v35 = vadd.s32 16, %v606_v10 }
   0x9   :  { %vm638_vm5 = vcmp.lt.s32.totalorder %v40_v21, 14  ;;  %vm642_vm6 = vcmp.lt.s32.totalorder %v54_v23, 14  ;;  %vm660_vm7 = vcmp.ge.s32.totalorder %v33_v34, 2  ;;  %v545_v59 = vpack.c.bf16 %v350_v58, %v349_v57 }
   0xa   :  { %135 = vrot.lane.b32.xlu0 %v22_v6, %s554_s24  ;;  %v124_v31 = vsel %vm638_vm5, %v112_v22, 0.0  ;;  %v126_v33 = vsel %vm642_vm6, %v114_v30, 0.0  ;;  %v102_v39 = vsel %vm660_vm7, %v93_v25, 0.0  ;;  %v47_v40 = vand.u32 15, %v27_v35 }
   0xb   :  { %149 = vrot.lane.b32.xlu1 %v124_v31, %s556_s0  ;;  %546 = vmatprep.subr.bf16.mxu1 %v545_v59  ;;  %vm359_vm13 = vcmask 195584  }
   0xc   :  { %vm668_vm11 = vcmp.ge.s32.totalorder %v47_v40, 2  ;;  %548 = vmatpush3.bf16.msra.mxu1 %v545_v59 }
   0xd   :  { %v104_v48 = vsel %vm668_vm11, %v91_v27, 0.0  ;;  %531 = vmatprep.subr.mxu1 %v351_v62 }
   0xe   :  { %151 = vrot.lane.b32.xlu0 %v111_v32, %s556_s0 }
   0xf   :  { %153 = vrot.lane.b32.xlu1 %v126_v33, %s556_s0 }
  0x10   :  { %532 = vmatpush3.msra.mxu1 %v351_v62 }
  0x74   :  { %v138_v37 = vpop.permute.xlu1 %137  ;;  %v132_v38 = vpop.permute.xlu0 %131 }
  0x75   :  { %v160_v42 = vsel %vm159_vm8, %v102_v39, %v132_v38  ;;  %v163_v53 = vsel %vm159_vm8, %v90_v24, %v138_v37 }
  0x78   :  { %v134_v41 = vpop.permute.xlu0 %133 }
  0x79   :  { %v148_v43 = vpop.permute.xlu1 %147  ;;  %v161_v47 = vsel %vm159_vm8, %v92_v26, %v134_v41 }
  0x7a   :  { %v165_v44 = vsel %vm164_vm9, %v160_v42, %v148_v43 }
  0x7b   :  { %521 = vmatprep.mubr.msk.f32.mxu0 %vm178_vm10, %v165_v44 }
  0x7c   :  { %v136_v46 = vpop.permute.xlu0 %135 }
  0x7d   :  { %v150_v49 = vpop.permute.xlu1 %149  ;;  %v162_v51 = vsel %vm159_vm8, %v104_v48, %v136_v46 }
  0x7e   :  { %v166_v50 = vsel %vm164_vm9, %v161_v47, %v150_v49  ;;  %v499_v47 = vld [vmem:[%s759_s4] ss:$0 sm:$0xff] }
  0x7f   :  { %522 = vmatmul.mubr.msk.f32.vlgmr.msra.gmra.mrb[0].mxu0 %vm178_vm10, %v166_v50 }
  0x80   :  { %v152_v52 = vpop.permute.xlu0 %151 }
  0x81   :  { %v167_v54 = vsel %vm164_vm9, %v162_v51, %v152_v52  ;;  %v154_v55 = vpop.permute.xlu1 %153 }
  0x82   :  { %v168_v56 = vsel %vm164_vm9, %v163_v53, %v154_v55  ;;  %524 = vmatprep.mubr.msk.f32.mxu0 %vm178_vm10, %v167_v54 }
  0x83   :  { %525 = vmatmul.mubr.msk.f32.gmra.mrb[2].mxu0 %vm178_vm10, %v168_v56 }
 0x152   :  { %v523_v61 = vpop.f32.mrb[0].mxu0 }
 0x153   :  { %v267_v63 = vadd.f32 %v523_v61, %v493_v60  ;;  %v261_v0 = vpop.f32.mrb[1].mxu0 }
 0x154   :  { %v262_v1 = vadd.f32 %v493_v60, %v261_v0 }
 0x155   :  { %v281_v2 = vmax.f32 %v267_v63, 0.0 }
 0x156   :  { %v280_v3 = vmax.f32 %v262_v1, 0.0  ;;  %v526_v4 = vpop.f32.mrb[2].mxu0 }
 0x157   :  { %v285_v5 = vrot.slane %v281_v2, 6  ;;  %314 = vrot.lane.b32.xlu1 %v281_v2, %s556_s0  ;;  %v277_v6 = vadd.f32 %v526_v4, %v493_v60  ;;  %v271_v7 = vpop.f32.mrb[3].mxu0  ;;  %v297_v8 = vrot.slane %v281_v2, 2 }
 0x158   :  { %v284_v9 = vrot.slane %v280_v3, 6  ;;  %v272_v11 = vadd.f32 %v493_v60, %v271_v7  ;;  %312 = vrot.lane.b32.xlu0 %v280_v3, %s556_s0  ;;  %v296_v12 = vrot.slane %v280_v3, 2 }
 0x159   :  { %v283_v13 = vmax.f32 %v277_v6, 0.0 }
 0x15a   :  { %v282_v14 = vmax.f32 %v272_v11, 0.0  ;;  %v302_v15 = vsel %vm110_vm3, %v296_v12, %v297_v8  ;;  %v290_v16 = vsel %vm89_vm4, %v284_v9, %v285_v5 }
 0x15b   :  { %v287_v17 = vrot.slane %v283_v13, 6  ;;  %318 = vrot.lane.b32.xlu1 %v283_v13, %s556_s0  ;;  %v299_v18 = vrot.slane %v283_v13, 2 }
 0x15c   :  { %v286_v19 = vrot.slane %v282_v14, 6  ;;  %v298_v20 = vrot.slane %v282_v14, 2  ;;  %328 = vrot.lane.b32.xlu0 %v302_v15, %s557_s2 }
 0x15d   :  { %v303_v21 = vsel %vm110_vm3, %v299_v18, %v296_v12  ;;  %v291_v22 = vsel %vm89_vm4, %v287_v17, %v284_v9 }
 0x15e   :  { %v301_v23 = vsel %vm110_vm3, %v297_v8, %v298_v20  ;;  %v300_v24 = vsel %vm110_vm3, %v298_v20, %v299_v18  ;;  %v288_v26 = vsel %vm89_vm4, %v286_v19, %v287_v17  ;;  %v289_v27 = vsel %vm89_vm4, %v285_v5, %v286_v19 }
 0x15f   :  { %v305_v25 = vsel %vm638_vm5, %v301_v23, 0.0  ;;  %v307_v30 = vsel %vm642_vm6, %v303_v21, 0.0  ;;  %v292_v10 = vsel %vm660_vm7, %v291_v22, 0.0  ;;  %v294_v36 = vsel %vm668_vm11, %v289_v27, 0.0 }
 0x160   :  { %316 = vrot.lane.b32.xlu0 %v282_v14, %s556_s0  ;;  %330 = vrot.lane.b32.xlu1 %v305_v25, %s557_s2 }
 0x164   :  { %332 = vrot.lane.b32.xlu0 %v300_v24, %s557_s2  ;;  %334 = vrot.lane.b32.xlu1 %v307_v30, %s557_s2 }
 0x168   :  { %465 = vrot.lane.b32.xlu0 %v262_v1, %s558_s3  ;;  %467 = vrot.lane.b32.xlu1 %v267_v63, %s558_s3 }
 0x16c   :  { %469 = vrot.lane.b32.xlu0 %v272_v11, %s558_s3  ;;  %471 = vrot.lane.b32.xlu1 %v277_v6, %s558_s3 }
 0x1c9   :  { %v315_v28 = vpop.permute.xlu1 %314 }
 0x1ca   :  { %v313_v31 = vpop.permute.xlu0 %312  ;;  %v341_v35 = vsel %vm164_vm9, %v290_v16, %v315_v28 }
 0x1cb   :  { %v340_v33 = vsel %vm164_vm9, %v292_v10, %v313_v31 }
 0x1cd   :  { %v319_v32 = vpop.permute.xlu1 %318 }
 0x1ce   :  { %v329_v34 = vpop.permute.xlu0 %328  ;;  %v343_v40 = vsel %vm164_vm9, %v288_v26, %v319_v32 }
 0x1cf   :  { %v345_v29 = vsel %vm344_vm12, %v340_v33, %v329_v34 }
 0x1d0   :  { %533 = vmatprep.mubr.msk.f32.mxu1 %vm359_vm13, %v345_v29 }
 0x1d2   :  { %v317_v37 = vpop.permute.xlu0 %316  ;;  %v331_v38 = vpop.permute.xlu1 %330 }
 0x1d3   :  { %v346_v39 = vsel %vm344_vm12, %v341_v35, %v331_v38  ;;  %v342_v41 = vsel %vm164_vm9, %v294_v36, %v317_v37 }
 0x1d4   :  { %534 = vmatmul.mubr.msk.f32.vlgmr.msra.gmra.mrb[0].mxu1 %vm359_vm13, %v346_v39 }
 0x1d6   :  { %v333_v42 = vpop.permute.xlu0 %332  ;;  %v335_v43 = vpop.permute.xlu1 %334 }
 0x1d7   :  { %v347_v44 = vsel %vm344_vm12, %v342_v41, %v333_v42  ;;  %v348_v46 = vsel %vm344_vm12, %v343_v40, %v335_v43 }
 0x1d8   :  { %536 = vmatprep.mubr.msk.f32.mxu1 %vm359_vm13, %v347_v44 }
 0x1d9   :  { %537 = vmatmul.mubr.msk.f32.gmra.mrb[2].mxu1 %vm359_vm13, %v348_v46 }
 0x1da   :  { %v468_v51 = vpop.permute.xlu1 %467  ;;  %v466_v53 = vpop.permute.xlu0 %465 }
 0x1de   :  { %v472_v0 = vpop.permute.xlu1 %471  ;;  %v470_v2 = vpop.permute.xlu0 %469 }
 0x2a7   :  { %v535_v45 = vpop.f32.mrb[0].mxu1 }
 0x2a8   :  { %v444_v48 = vadd.f32 %v535_v45, %v499_v47  ;;  %v438_v49 = vpop.f32.mrb[1].mxu1 }
 0x2a9   :  { %v439_v50 = vadd.f32 %v499_v47, %v438_v49 }
 0x2aa   :  { %v458_v52 = vmax.f32 %v444_v48, 0.0 }
 0x2ab   :  { %v457_v54 = vmax.f32 %v439_v50, 0.0 }
 0x2ac   :  { %v478_v55 = vadd.f32 %v468_v51, %v458_v52  ;;  %v538_v56 = vpop.f32.mrb[2].mxu1 }
 0x2ad   :  { %v477_v57 = vadd.f32 %v466_v53, %v457_v54  ;;  %v454_v58 = vadd.f32 %v538_v56, %v499_v47  ;;  %v448_v59 = vpop.f32.mrb[3].mxu1 }
 0x2ae   :  { %v482_v60 = vmax.f32 %v478_v55, 0.0  ;;  %v449_v61 = vadd.f32 %v499_v47, %v448_v59 }
 0x2af   :  { %v481_v62 = vmax.f32 %v477_v57, 0.0  ;;  %v460_v63 = vmax.f32 %v454_v58, 0.0 }
 0x2b0   :  { %486 = vst.msk [vmem:[%s760_s5 + $0x8] sm:$0xff] %vm164_vm9, %v482_v60  ;;  %v459_v1 = vmax.f32 %v449_v61, 0.0 }
 0x2b1   :  { %485 = vst.msk [vmem:[%s760_s5] sm:$0xff] %vm164_vm9, %v481_v62  ;;  %v480_v3 = vadd.f32 %v472_v0, %v460_v63 }
 0x2b2   :  { %v479_v4 = vadd.f32 %v470_v2, %v459_v1 }
 0x2b3   :  { %v484_v5 = vmax.f32 %v480_v3, 0.0 }
 0x2b4   :  { %v483_v6 = vmax.f32 %v479_v4, 0.0 }
 0x2b5   :  { %488 = vst.msk [vmem:[%s760_s5 + $0x18] sm:$0xff] %vm164_vm9, %v484_v5 }
 0x2b6   :  { %487 = vst.msk [vmem:[%s760_s5 + $0x10] sm:$0xff] %vm164_vm9, %v483_v6 }

</bundles_post_ra>
